<compile_context>
chip_gen: v7x
topology: tpu7x:2x2x1
jax: 0.10.0
libtpu: 0.0.40
codegen_flags: <defaults>
</compile_context>

<pallas_src>
import numpy as np

import jax
import jax.numpy as jnp
from jax.experimental import pallas as pl
from jax.experimental.pallas import tpu as pltpu


def _pick_batch_tile(batch, s):
    """Whole output images per grid step; make the lane tile a multiple of 128."""
    bt = max(1, -(-128 // s))
    if batch % bt == 0 and (bt * s) % 128 == 0:
        return bt
    return batch  # single block == full flattened dim (always a legal block shape)


def _make_downsample_kernel(c_out, c_pad, w_out, lanes, compute_dtype):
    n_taps = 9

    def kernel(ph_ref, w_ref, m_ref, o_ref, patch_ref):
        # ph_ref   : (4, c_pad, lanes)   compute dtype   stride-2 input phases
        # w_ref    : (c_out, 10*c_pad)   compute dtype   per-tap weights + bias col
        # m_ref    : (3, 1, lanes)       f32             boundary keep-masks
        # o_ref    : (c_out, lanes)      f32             lane-dense output tile
        # patch_ref: (10*c_pad, lanes)   f32 scratch     fused "im2col" patch

        # Tiny probe (one vreg iota + one roll) so the lane shifts below are
        # agnostic to pltpu.roll's rotation convention.
        probe_src = jax.lax.broadcasted_iota(
            jnp.int32, (8, 128), 1).astype(jnp.float32)
        probe = pltpu.roll(probe_src, shift=1, axis=1)
        fwd = (probe[0:1, 1:2] == 0.0).astype(jnp.float32)  # 1.0 iff roll==jnp.roll

        def shift_lanes(v, sh):
            # v shifted towards higher lane indices by `sh` (circular; the
            # wrapped / cross-image lanes are zeroed by the masks below).
            a = pltpu.roll(v, shift=sh, axis=1)
            b = pltpu.roll(v, shift=lanes - sh, axis=1)
            return fwd * a + (1.0 - fwd) * b

        # Load the 4 stride-2 phases once (upcast to f32 for shift/mask math).
        ph = [ph_ref[p].astype(jnp.float32) for p in range(4)]

        # Build the (9*c_pad, lanes) patch: tap (kh, kw) is one of the 4 phases,
        # lane-shifted by Wo (row shift) and/or 1 (col shift).
        k = 0
        for kh in range(3):
            for kw in range(3):
                p = 2 * (0 if kh == 1 else 1) + (0 if kw == 1 else 1)
                sh = (w_out if kh == 0 else 0) + (1 if kw == 0 else 0)
                tap = ph[p]
                if sh:
                    tap = shift_lanes(tap, sh)
                    mi = 2 if (kh == 0 and kw == 0) else (0 if kh == 0 else 1)
                    tap = tap * m_ref[mi]  # (1, lanes) broadcasts over channels
                patch_ref[k * c_pad:(k + 1) * c_pad, :] = tap
                k += 1

        # Constant block of ones -> bias is folded into the single matmul.
        patch_ref[n_taps * c_pad:(n_taps + 1) * c_pad, :] = jnp.ones(
            (c_pad, lanes), jnp.float32)

        # Single fused MXU matmul over K = 10*c_pad, f32 accumulation.
        patch = patch_ref[...].astype(compute_dtype)
        acc = jnp.dot(w_ref[...], patch, preferred_element_type=jnp.float32)
        o_ref[...] = acc.astype(o_ref.dtype)

    return kernel


def downsample_pallas(x, weight, bias, *, compute_dtype=jnp.bfloat16):
    """Equivalent of Downsample.forward: Conv2d(ch, ch, 3, stride=2, padding=1).

    x: (B, C, H, W) f32 NCHW, weight: (C, C, 3, 3) f32 OIHW, bias: (C,) f32.
    Returns (B, C, H//2, W//2) f32.
    """
    B, C, H, W = x.shape
    assert weight.shape == (C, C, 3, 3) and bias.shape == (C,)
    assert H % 2 == 0 and W % 2 == 0, (
        "Downsample kernel requires even H, W (the module's own output assert "
        "requires an exact (h//2, w//2) shape).")
    Ho, Wo = H // 2, W // 2
    S = Ho * Wo
    total = B * S
    Cp = ((C + 7) // 8) * 8          # pad contraction channels to sublane multiple

    B_tile = _pick_batch_tile(B, S)  # whole output images per grid step
    L = B_tile * S                   # output lane tile (multiple of 128 when possible)
    grid = (total // L,)

    # ---- glue: pure layout, ~1x the input in HBM (no conv arithmetic) ----------
    p_ee = x[:, :, 0::2, 0::2]
    p_eo = x[:, :, 0::2, 1::2]
    p_oe = x[:, :, 1::2, 0::2]
    p_oo = x[:, :, 1::2, 1::2]
    phases = jnp.stack([p_ee, p_eo, p_oe, p_oo], axis=0)       # (4, B, C, Ho, Wo)
    phases = jnp.transpose(phases, (0, 2, 1, 3, 4))            # (4, C, B, Ho, Wo)
    phases = phases.reshape(4, C, total)                       # lane = b*S + ho*Wo + wo
    if Cp != C:
        phases = jnp.pad(phases, ((0, 0), (0, Cp - C), (0, 0)))
    phases = phases.astype(compute_dtype)

    # Weight matrix for the fused matmul: column block k = kh*3+kw holds
    # weight[:, :, kh, kw]; the last block holds the bias in its first column.
    w_taps = jnp.transpose(weight, (2, 3, 0, 1)).reshape(9, C, C)   # [k, co, ci]
    if Cp != C:
        w_taps = jnp.pad(w_taps, ((0, 0), (0, 0), (0, Cp - C)))
    w_tap_mat = jnp.transpose(w_taps, (1, 0, 2)).reshape(C, 9 * Cp)
    w_bias = jnp.zeros((C, Cp), dtype=jnp.float32).at[:, 0].set(bias)
    w_mat = jnp.concatenate([w_tap_mat, w_bias], axis=1).astype(compute_dtype)

    # Boundary keep-masks for the shifted taps (periodic with period S; L is a
    # whole number of images, so one L-wide block serves every grid step).
    lane = jnp.arange(L, dtype=jnp.int32)
    m_row = ((lane % S) >= Wo).astype(jnp.float32)   # zero out ho == 0 (kh == 0 taps)
    m_col = ((lane % Wo) != 0).astype(jnp.float32)   # zero out wo == 0 (kw == 0 taps)
    masks = jnp.stack([m_row, m_col, m_row * m_col], axis=0)[:, None, :]  # (3, 1, L)

    kernel = _make_downsample_kernel(C, Cp, Wo, L, compute_dtype)
    cbytes = np.dtype(compute_dtype).itemsize
    cost = pl.CostEstimate(
        flops=2 * C * (10 * Cp) * total,
        transcendentals=0,
        bytes_accessed=(4 * Cp * total * cbytes + C * 10 * Cp * cbytes
                        + 3 * L * 4 + C * total * 4),
    )

    out_flat = pl.pallas_call(
        kernel,
        out_shape=jax.ShapeDtypeStruct((C, total), jnp.float32),
        grid_spec=pltpu.PrefetchScalarGridSpec(
            num_scalar_prefetch=0,
            grid=grid,
            in_specs=[
                pl.BlockSpec((4, Cp, L), lambda g: (0, 0, g)),
                # Grid-invariant operands (constant index_map -> fetched once).
                pl.BlockSpec((C, 10 * Cp), lambda g: (0, 0)),
                pl.BlockSpec((3, 1, L), lambda g: (0, 0, 0)),
            ],
            out_specs=pl.BlockSpec((C, L), lambda g: (0, g)),
            scratch_shapes=[pltpu.VMEM((10 * Cp, L), jnp.float32)],
        ),
        compiler_params=pltpu.CompilerParams(
            dimension_semantics=("parallel",),
            vmem_limit_bytes=64 * 1024 * 1024,
        ),
        cost_estimate=cost,
    )(phases, w_mat, masks)

    out = jnp.transpose(out_flat.reshape(C, B, Ho, Wo), (1, 0, 2, 3))
    assert out.shape == (B, C, H // 2, W // 2)
    return out


if __name__ == "__main__":
    # Small shapes consistent with the module: batch=2, channels=4, spatial=16.
    B, C, H, W = 2, 4, 16, 16

    key = jax.random.PRNGKey(0)
    kx, kwt, kb = jax.random.split(key, 3)
    x = jax.random.normal(kx, (B, C, H, W), dtype=jnp.float32)
    weight = 0.1 * jax.random.normal(kwt, (C, C, 3, 3), dtype=jnp.float32)
    bias = 0.1 * jax.random.normal(kb, (C,), dtype=jnp.float32)

    out = jax.jit(downsample_pallas)(x, weight, bias)
    out = jax.block_until_ready(out)

    # Reference: XLA's conv (same semantics as the PyTorch module), f32.
    ref = jax.lax.conv_general_dilated(
        x,
        weight,
        window_strides=(2, 2),
        padding=((1, 1), (1, 1)),
        dimension_numbers=("NCHW", "OIHW", "NCHW"),
        precision=jax.lax.Precision.HIGHEST,
    ) + bias[None, :, None, None]
    ref = jax.block_until_ready(ref)

    assert out.shape == (B, C, H // 2, W // 2), out.shape
    max_err = float(jnp.max(jnp.abs(out - ref)))
    # bf16 inputs with f32 accumulation -> expect ~1e-3 max error at these scales.
    assert jnp.allclose(out, ref, rtol=2e-2, atol=2e-2), max_err
    print("KERNEL_OK")
</pallas_src>

<mosaic_0001>
module attributes {stable_mosaic.version = 11 : i64} {
  func.func @kernel(%arg0: i32, %arg1: memref<4x8x128xbf16, #tpu.memory_space<vmem>>, %arg2: memref<4x80xbf16, #tpu.memory_space<vmem>>, %arg3: memref<3x1x128xf32, #tpu.memory_space<vmem>>, %arg4: memref<4x128xf32, #tpu.memory_space<vmem>>, %arg5: memref<80x128xf32, #tpu.memory_space<vmem>>) attributes {dimension_semantics = [#tpu.dimension_semantics<parallel>], iteration_bounds = array<i64: 1>, scalar_prefetch = 0 : i64, scratch_operands = 1 : i64, tpu.core_type = #tpu.core_type<tc>, window_params = [{transform_indices = @transform_0, window_bounds = array<i64: 4, 8, 128>}, {pipeline_mode = #tpu.pipeline_mode<synchronous>, transform_indices = @transform_1, window_bounds = array<i64: 4, 80>}, {pipeline_mode = #tpu.pipeline_mode<synchronous>, transform_indices = @transform_2, window_bounds = array<i64: 3, 1, 128>}, {transform_indices = @transform_3, window_bounds = array<i64: 4, 128>}]} {
    %0 = tpu.iota {dimensions = array<i32: 1>} : vector<8x128xi32>
    %1 = arith.sitofp %0 : vector<8x128xi32> to vector<8x128xf32>
    %c1_i32 = arith.constant 1 : i32
    %2 = tpu.dynamic_rotate %1 by %c1_i32 dim 1 : vector<8x128xf32>, i32 -> vector<8x128xf32>
    %3 = vector.extract_strided_slice %2 {offsets = [0, 1], sizes = [1, 1], strides = [1, 1]} : vector<8x128xf32> to vector<1x1xf32>
    %cst = arith.constant 0.000000e+00 : f32
    %4 = vector.broadcast %cst : f32 to vector<1x1xf32>
    %5 = arith.cmpf oeq, %3, %4 : vector<1x1xf32>
    %6 = arith.extui %5 : vector<1x1xi1> to vector<1x1xi32>
    %7 = arith.sitofp %6 : vector<1x1xi32> to vector<1x1xf32>
    %c0 = arith.constant 0 : index
    %c0_0 = arith.constant 0 : index
    %c0_1 = arith.constant 0 : index
    %8 = vector.load %arg1[%c0, %c0_0, %c0_1] : memref<4x8x128xbf16, #tpu.memory_space<vmem>>, vector<1x8x128xbf16>
    %9 = vector.shape_cast %8 : vector<1x8x128xbf16> to vector<8x128xbf16>
    %10 = arith.extf %9 : vector<8x128xbf16> to vector<8x128xf32>
    %c1 = arith.constant 1 : index
    %c0_2 = arith.constant 0 : index
    %c0_3 = arith.constant 0 : index
    %11 = vector.load %arg1[%c1, %c0_2, %c0_3] : memref<4x8x128xbf16, #tpu.memory_space<vmem>>, vector<1x8x128xbf16>
    %12 = vector.shape_cast %11 : vector<1x8x128xbf16> to vector<8x128xbf16>
    %13 = arith.extf %12 : vector<8x128xbf16> to vector<8x128xf32>
    %c2 = arith.constant 2 : index
    %c0_4 = arith.constant 0 : index
    %c0_5 = arith.constant 0 : index
    %14 = vector.load %arg1[%c2, %c0_4, %c0_5] : memref<4x8x128xbf16, #tpu.memory_space<vmem>>, vector<1x8x128xbf16>
    %15 = vector.shape_cast %14 : vector<1x8x128xbf16> to vector<8x128xbf16>
    %16 = arith.extf %15 : vector<8x128xbf16> to vector<8x128xf32>
    %c3 = arith.constant 3 : index
    %c0_6 = arith.constant 0 : index
    %c0_7 = arith.constant 0 : index
    %17 = vector.load %arg1[%c3, %c0_6, %c0_7] : memref<4x8x128xbf16, #tpu.memory_space<vmem>>, vector<1x8x128xbf16>
    %18 = vector.shape_cast %17 : vector<1x8x128xbf16> to vector<8x128xbf16>
    %19 = arith.extf %18 : vector<8x128xbf16> to vector<8x128xf32>
    %c9_i32 = arith.constant 9 : i32
    %20 = tpu.dynamic_rotate %19 by %c9_i32 dim 1 : vector<8x128xf32>, i32 -> vector<8x128xf32>
    %c119_i32 = arith.constant 119 : i32
    %21 = tpu.dynamic_rotate %19 by %c119_i32 dim 1 : vector<8x128xf32>, i32 -> vector<8x128xf32>
    %22 = vector.broadcast %7 : vector<1x1xf32> to vector<8x128xf32>
    %23 = arith.mulf %22, %20 : vector<8x128xf32>
    %cst_8 = arith.constant 1.000000e+00 : f32
    %24 = vector.broadcast %cst_8 : f32 to vector<1x1xf32>
    %25 = arith.subf %24, %7 : vector<1x1xf32>
    %26 = vector.broadcast %25 : vector<1x1xf32> to vector<8x128xf32>
    %27 = arith.mulf %26, %21 : vector<8x128xf32>
    %28 = arith.addf %23, %27 : vector<8x128xf32>
    %c2_9 = arith.constant 2 : index
    %c0_10 = arith.constant 0 : index
    %c0_11 = arith.constant 0 : index
    %29 = vector.load %arg3[%c2_9, %c0_10, %c0_11] : memref<3x1x128xf32, #tpu.memory_space<vmem>>, vector<1x1x128xf32>
    %30 = vector.shape_cast %29 : vector<1x1x128xf32> to vector<1x128xf32>
    %31 = vector.broadcast %30 : vector<1x128xf32> to vector<8x128xf32>
    %32 = arith.mulf %28, %31 : vector<8x128xf32>
    %c0_12 = arith.constant 0 : index
    %c0_13 = arith.constant 0 : index
    %33 = vector.load %arg5[%c0_12, %c0_13] : memref<80x128xf32, #tpu.memory_space<vmem>>, vector<8x128xf32>
    tpu.vector_store %arg5[%c0_12, %c0_13], %32 {strides = array<i32>} : memref<80x128xf32, #tpu.memory_space<vmem>>, vector<8x128xf32>,
    %c8_i32 = arith.constant 8 : i32
    %34 = tpu.dynamic_rotate %16 by %c8_i32 dim 1 : vector<8x128xf32>, i32 -> vector<8x128xf32>
    %c120_i32 = arith.constant 120 : i32
    %35 = tpu.dynamic_rotate %16 by %c120_i32 dim 1 : vector<8x128xf32>, i32 -> vector<8x128xf32>
    %36 = vector.broadcast %7 : vector<1x1xf32> to vector<8x128xf32>
    %37 = arith.mulf %36, %34 : vector<8x128xf32>
    %cst_14 = arith.constant 1.000000e+00 : f32
    %38 = vector.broadcast %cst_14 : f32 to vector<1x1xf32>
    %39 = arith.subf %38, %7 : vector<1x1xf32>
    %40 = vector.broadcast %39 : vector<1x1xf32> to vector<8x128xf32>
    %41 = arith.mulf %40, %35 : vector<8x128xf32>
    %42 = arith.addf %37, %41 : vector<8x128xf32>
    %c0_15 = arith.constant 0 : index
    %c0_16 = arith.constant 0 : index
    %c0_17 = arith.constant 0 : index
    %43 = vector.load %arg3[%c0_15, %c0_16, %c0_17] : memref<3x1x128xf32, #tpu.memory_space<vmem>>, vector<1x1x128xf32>
    %44 = vector.shape_cast %43 : vector<1x1x128xf32> to vector<1x128xf32>
    %45 = vector.broadcast %44 : vector<1x128xf32> to vector<8x128xf32>
    %46 = arith.mulf %42, %45 : vector<8x128xf32>
    %c8 = arith.constant 8 : index
    %c0_18 = arith.constant 0 : index
    %47 = vector.load %arg5[%c8, %c0_18] : memref<80x128xf32, #tpu.memory_space<vmem>>, vector<8x128xf32>
    tpu.vector_store %arg5[%c8, %c0_18], %46 {strides = array<i32>} : memref<80x128xf32, #tpu.memory_space<vmem>>, vector<8x128xf32>,
    %c8_i32_19 = arith.constant 8 : i32
    %48 = tpu.dynamic_rotate %19 by %c8_i32_19 dim 1 : vector<8x128xf32>, i32 -> vector<8x128xf32>
    %c120_i32_20 = arith.constant 120 : i32
    %49 = tpu.dynamic_rotate %19 by %c120_i32_20 dim 1 : vector<8x128xf32>, i32 -> vector<8x128xf32>
    %50 = vector.broadcast %7 : vector<1x1xf32> to vector<8x128xf32>
    %51 = arith.mulf %50, %48 : vector<8x128xf32>
    %cst_21 = arith.constant 1.000000e+00 : f32
    %52 = vector.broadcast %cst_21 : f32 to vector<1x1xf32>
    %53 = arith.subf %52, %7 : vector<1x1xf32>
    %54 = vector.broadcast %53 : vector<1x1xf32> to vector<8x128xf32>
    %55 = arith.mulf %54, %49 : vector<8x128xf32>
    %56 = arith.addf %51, %55 : vector<8x128xf32>
    %c0_22 = arith.constant 0 : index
    %c0_23 = arith.constant 0 : index
    %c0_24 = arith.constant 0 : index
    %57 = vector.load %arg3[%c0_22, %c0_23, %c0_24] : memref<3x1x128xf32, #tpu.memory_space<vmem>>, vector<1x1x128xf32>
    %58 = vector.shape_cast %57 : vector<1x1x128xf32> to vector<1x128xf32>
    %59 = vector.broadcast %58 : vector<1x128xf32> to vector<8x128xf32>
    %60 = arith.mulf %56, %59 : vector<8x128xf32>
    %c16 = arith.constant 16 : index
    %c0_25 = arith.constant 0 : index
    %61 = vector.load %arg5[%c16, %c0_25] : memref<80x128xf32, #tpu.memory_space<vmem>>, vector<8x128xf32>
    tpu.vector_store %arg5[%c16, %c0_25], %60 {strides = array<i32>} : memref<80x128xf32, #tpu.memory_space<vmem>>, vector<8x128xf32>,
    %c1_i32_26 = arith.constant 1 : i32
    %62 = tpu.dynamic_rotate %13 by %c1_i32_26 dim 1 : vector<8x128xf32>, i32 -> vector<8x128xf32>
    %c127_i32 = arith.constant 127 : i32
    %63 = tpu.dynamic_rotate %13 by %c127_i32 dim 1 : vector<8x128xf32>, i32 -> vector<8x128xf32>
    %64 = vector.broadcast %7 : vector<1x1xf32> to vector<8x128xf32>
    %65 = arith.mulf %64, %62 : vector<8x128xf32>
    %cst_27 = arith.constant 1.000000e+00 : f32
    %66 = vector.broadcast %cst_27 : f32 to vector<1x1xf32>
    %67 = arith.subf %66, %7 : vector<1x1xf32>
    %68 = vector.broadcast %67 : vector<1x1xf32> to vector<8x128xf32>
    %69 = arith.mulf %68, %63 : vector<8x128xf32>
    %70 = arith.addf %65, %69 : vector<8x128xf32>
    %c1_28 = arith.constant 1 : index
    %c0_29 = arith.constant 0 : index
    %c0_30 = arith.constant 0 : index
    %71 = vector.load %arg3[%c1_28, %c0_29, %c0_30] : memref<3x1x128xf32, #tpu.memory_space<vmem>>, vector<1x1x128xf32>
    %72 = vector.shape_cast %71 : vector<1x1x128xf32> to vector<1x128xf32>
    %73 = vector.broadcast %72 : vector<1x128xf32> to vector<8x128xf32>
    %74 = arith.mulf %70, %73 : vector<8x128xf32>
    %c24 = arith.constant 24 : index
    %c0_31 = arith.constant 0 : index
    %75 = vector.load %arg5[%c24, %c0_31] : memref<80x128xf32, #tpu.memory_space<vmem>>, vector<8x128xf32>
    tpu.vector_store %arg5[%c24, %c0_31], %74 {strides = array<i32>} : memref<80x128xf32, #tpu.memory_space<vmem>>, vector<8x128xf32>,
    %c32 = arith.constant 32 : index
    %c0_32 = arith.constant 0 : index
    %76 = vector.load %arg5[%c32, %c0_32] : memref<80x128xf32, #tpu.memory_space<vmem>>, vector<8x128xf32>
    tpu.vector_store %arg5[%c32, %c0_32], %10 {strides = array<i32>} : memref<80x128xf32, #tpu.memory_space<vmem>>, vector<8x128xf32>,
    %c40 = arith.constant 40 : index
    %c0_33 = arith.constant 0 : index
    %77 = vector.load %arg5[%c40, %c0_33] : memref<80x128xf32, #tpu.memory_space<vmem>>, vector<8x128xf32>
    tpu.vector_store %arg5[%c40, %c0_33], %13 {strides = array<i32>} : memref<80x128xf32, #tpu.memory_space<vmem>>, vector<8x128xf32>,
    %c1_i32_34 = arith.constant 1 : i32
    %78 = tpu.dynamic_rotate %19 by %c1_i32_34 dim 1 : vector<8x128xf32>, i32 -> vector<8x128xf32>
    %c127_i32_35 = arith.constant 127 : i32
    %79 = tpu.dynamic_rotate %19 by %c127_i32_35 dim 1 : vector<8x128xf32>, i32 -> vector<8x128xf32>
    %80 = vector.broadcast %7 : vector<1x1xf32> to vector<8x128xf32>
    %81 = arith.mulf %80, %78 : vector<8x128xf32>
    %cst_36 = arith.constant 1.000000e+00 : f32
    %82 = vector.broadcast %cst_36 : f32 to vector<1x1xf32>
    %83 = arith.subf %82, %7 : vector<1x1xf32>
    %84 = vector.broadcast %83 : vector<1x1xf32> to vector<8x128xf32>
    %85 = arith.mulf %84, %79 : vector<8x128xf32>
    %86 = arith.addf %81, %85 : vector<8x128xf32>
    %c1_37 = arith.constant 1 : index
    %c0_38 = arith.constant 0 : index
    %c0_39 = arith.constant 0 : index
    %87 = vector.load %arg3[%c1_37, %c0_38, %c0_39] : memref<3x1x128xf32, #tpu.memory_space<vmem>>, vector<1x1x128xf32>
    %88 = vector.shape_cast %87 : vector<1x1x128xf32> to vector<1x128xf32>
    %89 = vector.broadcast %88 : vector<1x128xf32> to vector<8x128xf32>
    %90 = arith.mulf %86, %89 : vector<8x128xf32>
    %c48 = arith.constant 48 : index
    %c0_40 = arith.constant 0 : index
    %91 = vector.load %arg5[%c48, %c0_40] : memref<80x128xf32, #tpu.memory_space<vmem>>, vector<8x128xf32>
    tpu.vector_store %arg5[%c48, %c0_40], %90 {strides = array<i32>} : memref<80x128xf32, #tpu.memory_space<vmem>>, vector<8x128xf32>,
    %c56 = arith.constant 56 : index
    %c0_41 = arith.constant 0 : index
    %92 = vector.load %arg5[%c56, %c0_41] : memref<80x128xf32, #tpu.memory_space<vmem>>, vector<8x128xf32>
    tpu.vector_store %arg5[%c56, %c0_41], %16 {strides = array<i32>} : memref<80x128xf32, #tpu.memory_space<vmem>>, vector<8x128xf32>,
    %c64 = arith.constant 64 : index
    %c0_42 = arith.constant 0 : index
    %93 = vector.load %arg5[%c64, %c0_42] : memref<80x128xf32, #tpu.memory_space<vmem>>, vector<8x128xf32>
    tpu.vector_store %arg5[%c64, %c0_42], %19 {strides = array<i32>} : memref<80x128xf32, #tpu.memory_space<vmem>>, vector<8x128xf32>,
    %cst_43 = arith.constant 1.000000e+00 : f32
    %94 = vector.broadcast %cst_43 : f32 to vector<8x128xf32>
    %c72 = arith.constant 72 : index
    %c0_44 = arith.constant 0 : index
    %95 = vector.load %arg5[%c72, %c0_44] : memref<80x128xf32, #tpu.memory_space<vmem>>, vector<8x128xf32>
    tpu.vector_store %arg5[%c72, %c0_44], %94 {strides = array<i32>} : memref<80x128xf32, #tpu.memory_space<vmem>>, vector<8x128xf32>,
    %c0_45 = arith.constant 0 : index
    %c0_46 = arith.constant 0 : index
    %96 = vector.load %arg5[%c0_45, %c0_46] : memref<80x128xf32, #tpu.memory_space<vmem>>, vector<80x128xf32>
    %97 = arith.truncf %96 : vector<80x128xf32> to vector<80x128xbf16>
    %c0_47 = arith.constant 0 : index
    %c0_48 = arith.constant 0 : index
    %98 = vector.load %arg2[%c0_47, %c0_48] : memref<4x80xbf16, #tpu.memory_space<vmem>>, vector<4x80xbf16>
    %cst_49 = arith.constant dense<0.000000e+00> : vector<4x128xf32>
    %99 = tpu.matmul %98, %97, %cst_49 {dimension_numbers = #tpu.dot_dimension_numbers<[1], [0], [0], [1], [0, 0, 1, 1], [], []>} : vector<4x80xbf16>, vector<80x128xbf16>, vector<4x128xf32> -> vector<4x128xf32>
    %c0_50 = arith.constant 0 : index
    %c0_51 = arith.constant 0 : index
    %100 = vector.load %arg4[%c0_50, %c0_51] : memref<4x128xf32, #tpu.memory_space<vmem>>, vector<4x128xf32>
    tpu.vector_store %arg4[%c0_50, %c0_51], %99 {strides = array<i32>} : memref<4x128xf32, #tpu.memory_space<vmem>>, vector<4x128xf32>,
    return
  }
  func.func @transform_0(%arg0: i32) -> (i32, i32, i32) {
    %c0_i32 = arith.constant 0 : i32
    %c0_i32_0 = arith.constant 0 : i32
    %c0_i32_1 = arith.constant 0 : i32
    return %c0_i32, %c0_i32_0, %arg0 : i32, i32, i32
  }
  func.func @transform_1(%arg0: i32) -> (i32, i32) {
    %c0_i32 = arith.constant 0 : i32
    %c0_i32_0 = arith.constant 0 : i32
    %c0_i32_1 = arith.constant 0 : i32
    return %c0_i32, %c0_i32_0 : i32, i32
  }
  func.func @transform_2(%arg0: i32) -> (i32, i32, i32) {
    %c0_i32 = arith.constant 0 : i32
    %c0_i32_0 = arith.constant 0 : i32
    %c0_i32_1 = arith.constant 0 : i32
    %c0_i32_2 = arith.constant 0 : i32
    return %c0_i32, %c0_i32_0, %c0_i32_1 : i32, i32, i32
  }
  func.func @transform_3(%arg0: i32) -> (i32, i32) {
    %c0_i32 = arith.constant 0 : i32
    %c0_i32_0 = arith.constant 0 : i32
    return %c0_i32, %arg0 : i32, i32
  }
}

</mosaic_0001>

<bundles_post_ra>
// kernel: downsample_pallas.1
= control target key start
LH: loop header
LB: loop body
LE: loop exit
PB: predicated region body
PF: predicated region fallthrough
CT: control target
= control target key end

     0   :  { %8 = vsyncpa [#allocation4], 0  ;;  %s528_s0 = inlined_call_operand.hbm [shape: bf16[4,8,128], index: 0, kind: input, shape index: {}]   ;;  %s529_s1 = inlined_call_operand.hbm [shape: bf16[4,80], index: 1, kind: input, shape index: {}]   ;;  %s530_s2 = inlined_call_operand.hbm [shape: f32[3,1,128], index: 2, kind: input, shape index: {}]   ;;  %s531_s3 = inlined_call_operand.hbm [shape: f32[4,128], index: 3, kind: output, shape index: {}]  }
   0x1   :  { %9 = vsyncpa [#allocation7], 0 }
   0x2   :  { %10 = vsyncpa [#allocation5], 0  ;;  %s410_s12 = smov [#allocation6]   ;;  %s411_s14 = smov [#allocation3]  }
   0x3   :  { %s29_s13 = sshll.u32 %s410_s12, 4  ;;  %s16_s15 = sshll.u32 %s411_s14, 4  ;;  %s30_s13 = int_to_ptr.vmem [resolvable:$true] %s29_s13  ;;  %s446_s15 = int_to_ptr.vmem [resolvable:$true] %s16_s15 }
   0x4   :  { %s316_s18 = scalar_lea.hbm %s529_s1, 32 }
   0x5   :  { %p317_p0 = scmp.ne.s32.totalorder %s529_s1, %s316_s18  ;;  %p320_p1 = scmp.lt.u32.totalorder %s316_s18, %s529_s1 }
   0x7   :  { %p322_p2 = pnand %p320_p1, %p317_p0 }
   0x9   :  { %325 = shalt.err (!%p322_p2)
}
   0xa   :  { %s326_s23 = scalar_lea.vmem %s30_s13, 32  ;;  %p331_p4 = scmp.lt.s32.totalorder %s30_s13, %s30_s13 }
   0xb   :  { %p327_p3 = scmp.ne.s32.totalorder %s30_s13, %s326_s23  ;;  %p332_p5 = scmp.lt.s32.totalorder %s326_s23, %s326_s23 }
   0xd   :  { %p333_p6 = por %p332_p5, %p331_p4 }
   0xf   :  { %p334_p7 = pnand %p333_p6, %p327_p3 }
  0x11   :  { %337 = shalt.err (!%p334_p7)
}
  0x12   :  { %32 = dma.hbm_to_vmem [thread:$0]  %s529_s1, 32, %s30_s13, [#allocation7]  }
  0x13   :  { %s338_s28 = scalar_lea.hbm %s528_s0, 256 }
  0x14   :  { %p339_p8 = scmp.ne.s32.totalorder %s528_s0, %s338_s28  ;;  %p342_p9 = scmp.lt.u32.totalorder %s338_s28, %s528_s0 }
  0x16   :  { %p344_p10 = pnand %p342_p9, %p339_p8 }
  0x18   :  { %347 = shalt.err (!%p344_p10)
}
  0x19   :  { %s348_s6 = scalar_lea.vmem %s446_s15, 256  ;;  %p353_p12 = scmp.lt.s32.totalorder %s446_s15, %s446_s15 }
  0x1a   :  { %p349_p11 = scmp.ne.s32.totalorder %s446_s15, %s348_s6  ;;  %p354_p13 = scmp.lt.s32.totalorder %s348_s6, %s348_s6 }
  0x1c   :  { %p355_p0 = por %p354_p13, %p353_p12 }
  0x1e   :  { %p356_p1 = pnand %p355_p0, %p349_p11 }
  0x20   :  { %359 = shalt.err (!%p356_p1)
}
  0x21   :  { %s412_s1 = smov 64   ;;  %s413_s7 = smov 4  }
  0x22   :  { %22 = dma.hbm_to_vmem [thread:$0]  %s528_s0, 256, %s446_s15, [#allocation4], %s412_s1, %s412_s1, %s413_s7  }
  0x23   :  { %s414_s10 = smov [#allocation8]   ;;  %s360_s14 = scalar_lea.hbm %s530_s2, 48 }
  0x24   :  { %s38_s11 = sshll.u32 %s414_s10, 4  ;;  %p361_p2 = scmp.ne.s32.totalorder %s530_s2, %s360_s14  ;;  %s39_s11 = int_to_ptr.vmem [resolvable:$true] %s38_s11 }
  0x25   :  { %p364_p3 = scmp.lt.u32.totalorder %s360_s14, %s530_s2 }
  0x27   :  { %p366_p4 = pnand %p364_p3, %p361_p2 }
  0x29   :  { %369 = shalt.err (!%p366_p4)
}
  0x2a   :  { %s370_s20 = scalar_lea.vmem %s39_s11, 48  ;;  %s374_s0 = scalar_lea.vmem %s39_s11, 64 }
  0x2b   :  { %p371_p5 = scmp.ne.s32.totalorder %s39_s11, %s370_s20  ;;  %p375_p6 = scmp.lt.s32.totalorder %s39_s11, %s39_s11 }
  0x2c   :  { %p376_p7 = scmp.lt.s32.totalorder %s374_s0, %s370_s20 }
  0x2e   :  { %p377_p8 = por %p376_p7, %p375_p6 }
  0x30   :  { %p378_p9 = pnand %p377_p8, %p371_p5 }
  0x32   :  { %381 = shalt.err (!%p378_p9)
}
  0x33   :  { %s415_s15 = smov 16   ;;  %s416_s21 = smov 1  }
  0x34   :  { %44 = dma.hbm_to_vmem [thread:$0]  %s530_s2, 48, %s39_s11, [#allocation7], %s415_s15, %s415_s15, %s416_s21  }
  0x35   :  { %404 = dma.done.wait [#allocation4], 256  }
  0x36   :  { %405 = vsyncadd [#allocation4], 4294967040  ;;  %v55_v0 = vlaneseq }
  0x37   :  { %406 = dma.done.wait [#allocation7], 80  }
  0x38   :  { %407 = vsyncadd [#allocation7], 4294967216  ;;  %v417_v1 = vmov 0.0   ;;  %v56_v2 = vand.u32 127, %v55_v0  ;;  %v493_v6 = vld [vmem:[#allocation3 + $0x8] sm:$0xff]   ;;  %s418_s24 = smov 127  }
  0x39   :  { %272 = vmatprep.subr.bf16.mxu0 %v417_v1  ;;  %v496_v8 = vunpack.c.h.bf16 %v493_v6  ;;  %v264_v9 = vunpack.c.l.bf16 %v493_v6  ;;  %s419_s2 = smov 119   ;;  %s420_s25 = smov 9   ;;  %v259_v11 = vld [vmem:[#allocation3] sm:$0xff]   ;;  %vm423_vm1 = vmmov 0   ;;  %v252_v35 = vld [vmem:[#allocation8 + $0x2] ss:$0 sm:$0xff] }
  0x3a   :  { %v57_v3 = vcvt.s32.f32 %v56_v2  ;;  %s421_s26 = smov 120   ;;  %s422_s27 = smov 8   ;;  %v261_v12 = vunpack.c.h.bf16 %v259_v11  ;;  %282 = vmatprep.mubr.msk.bf16.mxu0 %vm423_vm1, %v417_v1  ;;  %v253_v36 = vld [vmem:[#allocation8] ss:$0 sm:$0xff]  ;;  %v256_v41 = vld [vmem:[#allocation8 + $0x1] ss:$0 sm:$0xff] }
  0x3b   :  { %v311_v10 = vpack.i.bf16 %v496_v8, %v264_v9  ;;  %v424_v55 = vmov 1.0   ;;  %v189_v57 = vld [vmem:[#allocation6] sm:$0x3]  ;;  %vm190_vm2 = vcmask 654336   ;;  %s425_s30 = smov [#allocation9]  }
  0x3c   :  { %58 = vrot.lane.b32.xlu0 %v57_v3, %s416_s21  ;;  %v188_v56 = vpack.c.bf16 %v424_v55, %v496_v8  ;;  %s241_s4 = sshll.u32 %s425_s30, 4  ;;  %s242_s4 = int_to_ptr.vmem [resolvable:$true] %s241_s4 }
  0x3d   :  { %s382_s5 = scalar_lea.vmem %s242_s4, 64  ;;  %p387_p11 = scmp.lt.s32.totalorder %s242_s4, %s242_s4 }
  0x3e   :  { %p383_p10 = scmp.ne.s32.totalorder %s242_s4, %s382_s5  ;;  %p388_p12 = scmp.lt.s32.totalorder %s382_s5, %s382_s5 }
  0x40   :  { %p389_p13 = por %p388_p12, %p387_p11 }
  0x42   :  { %p390_p0 = pnand %p389_p13, %p383_p10 }
  0xae   :  { %v59_v4 = vpop.permute.xlu0 %58 }
  0xaf   :  { %vm60_vm0 = vcmp.eq.f32.partialorder %v59_v4, 0.0 }
  0xb0   :  { %v251_v5 = vsel %vm60_vm0, 1.0, %v417_v1 }
  0xb1   :  { %79 = vrot.lane.b32.xlu0 %v251_v5, %s418_s24  ;;  %v85_v7 = vsub.f32 1.0, %v251_v5 }
  0xb3   :  { %87 = vrot.lane.b32.xlu1 %v85_v7, %s418_s24 }
  0xb5   :  { %76 = vrot.lane.b32.xlu0 %v496_v8, %s419_s2 }
  0xb7   :  { %74 = vrot.lane.b32.xlu1 %v496_v8, %s420_s25 }
  0xb9   :  { %312 = vrot.lane.b32.xlu0 %v311_v10, %s421_s26 }
  0xbb   :  { %307 = vrot.lane.b32.xlu1 %v311_v10, %s422_s27 }
  0xbd   :  { %138 = vrot.lane.b32.xlu0 %v261_v12, %s418_s24 }
  0xbf   :  { %136 = vrot.lane.b32.xlu1 %v261_v12, %s416_s21 }
  0xc1   :  { %157 = vrot.lane.b32.xlu0 %v496_v8, %s418_s24 }
  0xc3   :  { %155 = vrot.lane.b32.xlu1 %v496_v8, %s416_s21 }
 0x123   :  { %v80_v13 = vpop.permute.xlu0 %79 }
 0x124   :  { %286 = vpush %v80_v13 }
 0x125   :  { %v88_v14 = vpop.permute.xlu1 %87 }
 0x126   :  { %288 = vpush %v88_v14 }
 0x127   :  { %v77_v15 = vpop.permute.xlu0 %76 }
 0x129   :  { %v75_v16 = vpop.permute.xlu1 %74 }
 0x12b   :  { %v313_v17 = vpop.permute.xlu0 %312 }
 0x12c   :  { %v315_v21 = vunpack.i.h.bf16 %v313_v17  ;;  %v314_v22 = vunpack.i.l.bf16 %v313_v17 }
 0x12d   :  { %v308_v18 = vpop.permute.xlu1 %307 }
 0x12e   :  { %v310_v19 = vunpack.i.h.bf16 %v308_v18  ;;  %v309_v20 = vunpack.i.l.bf16 %v308_v18 }
 0x12f   :  { %v139_v23 = vpop.permute.xlu0 %138 }
 0x131   :  { %v137_v25 = vpop.permute.xlu1 %136 }
 0x133   :  { %v158_v42 = vpop.permute.xlu0 %157 }
 0x135   :  { %v156_v45 = vpop.permute.xlu1 %155 }
 0x155   :  { %s287_s28 = spop %286 }
 0x156   :  { %v82_v24 = vstv %s287_s28 }
 0x157   :  { %v84_v26 = vmul.f32 %v82_v24, %v75_v16  ;;  %s289_s29 = spop %288  ;;  %v108_v27 = vmul.f32 %v309_v20, %v82_v24  ;;  %v124_v28 = vmul.f32 %v310_v19, %v82_v24  ;;  %v140_v29 = vmul.f32 %v137_v25, %v82_v24 }
 0x158   :  { %v90_v30 = vstv %s289_s29  ;;  %v159_v50 = vmul.f32 %v156_v45, %v82_v24 }
 0x159   :  { %v92_v31 = vmul.f32 %v90_v30, %v77_v15  ;;  %v109_v32 = vmul.f32 %v314_v22, %v90_v30  ;;  %v125_v33 = vmul.f32 %v315_v21, %v90_v30  ;;  %v141_v34 = vmul.f32 %v139_v23, %v90_v30 }
 0x15a   :  { %v160_v46 = vmul.f32 %v158_v42, %v90_v30 }
 0x15b   :  { %v93_v37 = vadd.f32 %v92_v31, %v84_v26  ;;  %v110_v38 = vadd.f32 %v109_v32, %v108_v27  ;;  %v126_v39 = vadd.f32 %v125_v33, %v124_v28  ;;  %v142_v40 = vadd.f32 %v141_v34, %v140_v29 }
 0x15c   :  { %v161_v51 = vadd.f32 %v160_v46, %v159_v50 }
 0x15d   :  { %v102_v43 = vmul.f32 %v252_v35, %v93_v37  ;;  %v118_v44 = vmul.f32 %v253_v36, %v110_v38  ;;  %v134_v48 = vmul.f32 %v253_v36, %v126_v39  ;;  %v151_v49 = vmul.f32 %v256_v41, %v142_v40 }
 0x15e   :  { %v169_v53 = vmul.f32 %v256_v41, %v161_v51 }
 0x15f   :  { %v184_v47 = vpack.c.bf16 %v118_v44, %v102_v43  ;;  %v185_v52 = vpack.c.bf16 %v151_v49, %v134_v48 }
 0x160   :  { %v187_v54 = vpack.c.bf16 %v264_v9, %v169_v53 }
 0x161   :  { %273 = vmatpush3.bf16.msra.mxu0 %v184_v47 }
 0x162   :  { %274 = vmatprep.subr.bf16.mxu0 %v417_v1 }
 0x165   :  { %275 = vmatpush3.bf16.msra.mxu0 %v185_v52 }
 0x166   :  { %276 = vmatprep.subr.bf16.mxu0 %v417_v1 }
 0x169   :  { %277 = vmatpush3.bf16.msra.mxu0 %v259_v11 }
 0x16a   :  { %278 = vmatprep.subr.bf16.mxu0 %v417_v1 }
 0x16d   :  { %279 = vmatpush3.bf16.msra.mxu0 %v187_v54 }
 0x16e   :  { %280 = vmatprep.subr.bf16.mxu0 %v417_v1 }
 0x171   :  { %281 = vmatpush3.bf16.msra.mxu0 %v188_v56 }
 0x174   :  { %283 = vmatmul.mubr.msk.bf16.vlgmr.msra.gmra.mrb[0].mxu0 %vm190_vm2, %v189_v57 }
 0x247   :  { %v228_v58 = vpop.f32.mrb[0].mxu0 }
 0x248   :  { %234 = vst [vmem:[#allocation9] sm:$0xf] %v228_v58  ;;  %v284_v59 = vpop.f32.mrb[1].mxu0 }
 0x249   :  { %v231_v60 = vpop.f32.mrb[2].mxu0 }
 0x24a   :  { %393 = shalt.err (!%p390_p0)
}
 0x24b   :  { %s394_s7 = scalar_lea.hbm %s531_s3, 64 }
 0x24c   :  { %p395_p1 = scmp.ne.s32.totalorder %s531_s3, %s394_s7  ;;  %p398_p2 = scmp.lt.u32.totalorder %s394_s7, %s531_s3 }
 0x24e   :  { %p400_p3 = pnand %p398_p2, %p395_p1 }
 0x250   :  { %403 = shalt.err (!%p400_p3)
}
 0x251   :  { %244 = dma.vmem_to_hbm [thread:$0]  %s242_s4, 64, %s531_s3, [#allocation5]   ;;  %v285_v61 = vpop.f32.mrb[3].mxu0 }
 0x252   :  { %408 = dma.done.wait [#allocation5], 64  }
 0x253   :  { %409 = vsyncadd [#allocation5], 4294967232 }
 0x254   :  { %248 = vsyncpa [#allocation4], 1 }
 0x255   :  { %249 = vsyncpa [#allocation7], 1 }
 0x256   :  { %250 = vsyncpa [#allocation5], 1 }

</bundles_post_ra>
